<compile_context>
chip_gen: v7x
topology: tpu7x:2x2x1
jax: 0.10.0
libtpu: 0.0.40
codegen_flags: <defaults>
</compile_context>

<pallas_src>
import jax
import jax.numpy as jnp
from jax.experimental import pallas as pl
from jax.experimental.pallas import tpu as pltpu

BN_EPS = 1e-5
LEAKY_SLOPE = 0.01
CIN_ALIGN = 8                       # pad Cin so the contraction dim is sublane friendly
VMEM_LIMIT_BYTES = 32 * 1024 * 1024
SINGLE_SHOT_VMEM_BUDGET = 12 * 1024 * 1024   # conservative: fits v5e/v6e/v7x scoped VMEM


def _round_up(x, m):
    return (x + m - 1) // m * m


# ---------------------------------------------------------------------------
# Pallas kernels
# ---------------------------------------------------------------------------
def _fold_phase_stats(vec, n_phases, c_true):
    """(1, n_phases*c_true) -> (1, c_true): sum the phase groups (lane slices)."""
    out = vec[:, 0:c_true]
    for g in range(1, n_phases):
        out = out + vec[:, g * c_true:(g + 1) * c_true]
    return out


def _broadcast_phases(vec_c, n_phases):
    if n_phases == 1:
        return vec_c
    return jnp.concatenate([vec_c] * n_phases, axis=1)


def _make_single_shot_kernel(*, bn_act, has_bias, has_res, n_phases, c_true,
                             inv_count, n_rows_valid, n_rows_total):
    """Whole layer in one kernel invocation: matmul once, BN stats in-register,
    normalize + LeakyReLU (+skip), store.  No grid, no scratch."""

    def kernel(*refs):
        i = 0
        p_ref = refs[i]; i += 1                 # (Ppad, K)  bf16 patches
        w_ref = refs[i]; i += 1                 # (K, Ce)    bf16 weights
        b_ref = None
        r_ref = None
        if has_bias:
            b_ref = refs[i]; i += 1             # (1, Ce)    f32 bias
        if has_res:
            r_ref = refs[i]; i += 1             # (Ppad, Ce) bf16 skip (phase-packed)
        out_ref = refs[i]                       # (Ppad, Ce)

        acc = jnp.dot(p_ref[...], w_ref[...],
                      preferred_element_type=jnp.float32)
        if has_bias:
            acc = acc + b_ref[...].astype(jnp.float32)

        y = acc
        if bn_act:
            # mean per *true* channel (ConvTranspose phases share a channel).
            # Zero-padded rows produce acc == 0 (no bias in BN layers) so the
            # sum stays exact with the true-row inv_count.
            s = jnp.sum(acc, axis=0, keepdims=True)
            mean_c = _fold_phase_stats(s, n_phases, c_true) * inv_count
            mean = _broadcast_phases(mean_c, n_phases)

            d = acc - mean
            if n_rows_total != n_rows_valid:
                # mask the padded rows so the *centered* variance stays exact
                row = jax.lax.broadcasted_iota(jnp.int32, (n_rows_total, 1), 0)
                d = jnp.where(row < n_rows_valid, d, 0.0)
            q = jnp.sum(d * d, axis=0, keepdims=True)
            var_c = _fold_phase_stats(q, n_phases, c_true) * inv_count
            istd = _broadcast_phases(jax.lax.rsqrt(var_c + BN_EPS), n_phases)

            y = d * istd
            y = jnp.where(y >= 0, y, LEAKY_SLOPE * y)

        if has_res:
            y = y + r_ref[...].astype(jnp.float32)
        out_ref[...] = y.astype(out_ref.dtype)

    return kernel


def _make_tiled_kernel(*, bn_act, has_bias, has_res, n_phases, c_true,
                       inv_count):
    """Row-tiled fallback for large P.  BN path is two grid passes but the
    pre-BN f32 accumulator is cached in VMEM scratch: the matmul runs ONCE
    (pass 0) and pass 1 only reads the scratch (patches parked on block 0)."""

    def kernel(*refs):
        i = 0
        p_ref = refs[i]; i += 1                 # (BR, K)
        w_ref = refs[i]; i += 1                 # (K, Ce) VMEM-resident
        b_ref = None
        r_ref = None
        if has_bias:
            b_ref = refs[i]; i += 1             # (1, Ce)
        if has_res:
            r_ref = refs[i]; i += 1             # (BR, Ce)
        out_ref = refs[i]; i += 1               # (BR, Ce)

        if not bn_act:
            acc = jnp.dot(p_ref[...], w_ref[...],
                          preferred_element_type=jnp.float32)
            if has_bias:
                acc = acc + b_ref[...].astype(jnp.float32)
            if has_res:
                acc = acc + r_ref[...].astype(jnp.float32)
            out_ref[...] = acc.astype(out_ref.dtype)
            return

        acc_sc = refs[i]; i += 1                # (T, BR, Ce) f32 pre-BN cache
        sum_sc = refs[i]; i += 1                # (1, Ce) f32
        sq_sc = refs[i]; i += 1                 # (1, Ce) f32

        pid = pl.program_id(0)                  # pass: 0 = stats, 1 = emit
        tid = pl.program_id(1)                  # row tile

        @pl.when(jnp.logical_and(pid == 0, tid == 0))
        def _init():
            sum_sc[...] = jnp.zeros_like(sum_sc)
            sq_sc[...] = jnp.zeros_like(sq_sc)

        @pl.when(pid == 0)
        def _stats():
            acc = jnp.dot(p_ref[...], w_ref[...],
                          preferred_element_type=jnp.float32)
            if has_bias:
                acc = acc + b_ref[...].astype(jnp.float32)
            acc_sc[tid] = acc
            # zero-padded rows contribute 0 to both sums -> stats stay exact
            sum_sc[...] += jnp.sum(acc, axis=0, keepdims=True)
            sq_sc[...] += jnp.sum(acc * acc, axis=0, keepdims=True)

        @pl.when(pid == 1)
        def _emit():
            y = acc_sc[tid]
            mean_c = _fold_phase_stats(sum_sc[...], n_phases, c_true) * inv_count
            msq_c = _fold_phase_stats(sq_sc[...], n_phases, c_true) * inv_count
            var_c = jnp.maximum(msq_c - mean_c * mean_c, 0.0)
            istd_c = jax.lax.rsqrt(var_c + BN_EPS)
            mean = _broadcast_phases(mean_c, n_phases)
            istd = _broadcast_phases(istd_c, n_phases)
            y = (y - mean) * istd
            y = jnp.where(y >= 0, y, LEAKY_SLOPE * y)
            if has_res:
                y = y + r_ref[...].astype(jnp.float32)
            out_ref[...] = y.astype(out_ref.dtype)

    return kernel


# ---------------------------------------------------------------------------
# Fused layer launcher
# ---------------------------------------------------------------------------
def fused_conv_call(patches, w_mat, *, n_phases, bias=None, residual=None,
                    bn_act=True, out_dtype=jnp.bfloat16, force_row_tile=None):
    P, K = patches.shape
    Ce = w_mat.shape[1]
    c_true = Ce // n_phases
    inv_count = 1.0 / float(P * n_phases)
    has_bias = bias is not None
    has_res = residual is not None
    out_bytes = jnp.dtype(out_dtype).itemsize

    Ppad = _round_up(max(P, 8), 16)
    est = (Ppad * K * 2 + K * Ce * 2
           + (Ppad * Ce * 2 if has_res else 0)
           + Ppad * Ce * out_bytes
           + 2 * Ppad * Ce * 4)                 # f32 acc + intermediates headroom
    single_shot = (force_row_tile is None) and (est <= SINGLE_SHOT_VMEM_BUDGET)

    if single_shot:
        if Ppad != P:
            patches = jnp.pad(patches, ((0, Ppad - P), (0, 0)))
            if has_res:
                residual = jnp.pad(residual, ((0, Ppad - P), (0, 0)))
        kernel = _make_single_shot_kernel(
            bn_act=bn_act, has_bias=has_bias, has_res=has_res,
            n_phases=n_phases, c_true=c_true, inv_count=inv_count,
            n_rows_valid=P, n_rows_total=Ppad)
        args = [patches, w_mat]
        if has_bias:
            args.append(bias)
        if has_res:
            args.append(residual)
        out = pl.pallas_call(
            kernel,
            out_shape=jax.ShapeDtypeStruct((Ppad, Ce), out_dtype),
            compiler_params=pltpu.CompilerParams(
                vmem_limit_bytes=VMEM_LIMIT_BYTES),
        )(*args)
        return out[:P] if Ppad != P else out

    # ---- tiled fallback for large P ----
    if force_row_tile is not None:
        assert force_row_tile % 16 == 0
        BR = force_row_tile
    else:
        per_row = 2 * (K * 2 + (Ce * 2 if has_res else 0) + Ce * out_bytes) + Ce * 4
        BR = max(16, min(Ppad, (SINGLE_SHOT_VMEM_BUDGET // max(per_row, 1)) // 16 * 16))
    Ppad = _round_up(P, BR)
    T = Ppad // BR
    if Ppad != P:
        patches = jnp.pad(patches, ((0, Ppad - P), (0, 0)))
        if has_res:
            residual = jnp.pad(residual, ((0, Ppad - P), (0, 0)))

    if bn_act and T * BR * Ce * 4 > SINGLE_SHOT_VMEM_BUDGET:
        # TODO(synk): spill the pre-activation accumulator to an HBM output for
        #             very large P instead of a VMEM scratch.
        raise NotImplementedError("pre-BN accumulator scratch exceeds VMEM budget")

    kernel = _make_tiled_kernel(
        bn_act=bn_act, has_bias=has_bias, has_res=has_res,
        n_phases=n_phases, c_true=c_true, inv_count=inv_count)

    if bn_act:
        grid = (2, T)
        p_map = lambda p, t: (t * (1 - p), 0)    # pass 1: parked -> no patch re-DMA
        w_map = lambda p, t: (0, 0)              # weights VMEM-resident
        r_map = lambda p, t: (t * p, 0)          # pass 0: parked (unused)
        o_map = lambda p, t: (t * p, 0)          # pass 0: parked, pass 1: streamed
        scratch = [pltpu.VMEM((T, BR, Ce), jnp.float32),
                   pltpu.VMEM((1, Ce), jnp.float32),
                   pltpu.VMEM((1, Ce), jnp.float32)]
        dims = ("arbitrary", "arbitrary")        # shared stats -> sequential
    else:
        grid = (T,)
        p_map = lambda t: (t, 0)
        w_map = lambda t: (0, 0)
        r_map = lambda t: (t, 0)
        o_map = lambda t: (t, 0)
        scratch = []
        dims = ("arbitrary",)

    in_specs = [pl.BlockSpec((BR, K), p_map),
                pl.BlockSpec((K, Ce), w_map)]
    args = [patches, w_mat]
    if has_bias:
        in_specs.append(pl.BlockSpec((1, Ce), w_map))
        args.append(bias)
    if has_res:
        in_specs.append(pl.BlockSpec((BR, Ce), r_map))
        args.append(residual)

    out = pl.pallas_call(
        kernel,
        grid=grid,
        in_specs=in_specs,
        out_specs=pl.BlockSpec((BR, Ce), o_map),
        out_shape=jax.ShapeDtypeStruct((Ppad, Ce), out_dtype),
        scratch_shapes=scratch,
        compiler_params=pltpu.CompilerParams(
            dimension_semantics=dims, vmem_limit_bytes=VMEM_LIMIT_BYTES),
    )(*args)
    return out[:P] if Ppad != P else out


# ---------------------------------------------------------------------------
# Layout glue (plain JAX): channel pad, im2col, weight conversion, sub-pixel
# ---------------------------------------------------------------------------
def _pad_channels(x, mult=CIN_ALIGN):
    c = x.shape[-1]
    cp = _round_up(c, mult)
    if cp == c:
        return x
    return jnp.pad(x, [(0, 0)] * (x.ndim - 1) + [(0, cp - c)])


def _im2col(x_nhwc, kh, kw, sh, sw, ph, pw):
    N, H, W, C = x_nhwc.shape
    xp = jnp.pad(x_nhwc, ((0, 0), (ph, ph), (pw, pw), (0, 0)))
    Ho = (H + 2 * ph - kh) // sh + 1
    Wo = (W + 2 * pw - kw) // sw + 1
    cols = []
    for i in range(kh):
        for j in range(kw):
            cols.append(xp[:, i:i + sh * (Ho - 1) + 1:sh,
                           j:j + sw * (Wo - 1) + 1:sw, :])
    patches = jnp.concatenate(cols, axis=-1)          # (N, Ho, Wo, kh*kw*C)
    return patches.reshape(N * Ho * Wo, kh * kw * C), (N, Ho, Wo)


def _conv_w_to_mat(w, cin_pad):                        # torch (Cout, Cin, KH, KW)
    cout, cin, kh, kw = w.shape
    wt = jnp.transpose(w, (2, 3, 1, 0))                # (KH, KW, Cin, Cout)
    if cin_pad != cin:
        wt = jnp.pad(wt, ((0, 0), (0, 0), (0, cin_pad - cin), (0, 0)))
    return wt.reshape(kh * kw * cin_pad, cout)


def _subpixel_plan(K, s, p, op):
    """Per-dim plan: ConvTranspose -> stride-1 conv on the un-dilated input
    + phase interleave.  Only the two configurations used by UNetVad."""
    if s == 1:
        assert K == 1 and p == 0 and op == 0
        return 1, 0, [[0]]                 # taps, eff pad, tap index per phase
    assert (K, s, p, op) == (5, 2, 2, 1)
    # phase r, tap a  ->  transposed-kernel index k = 4 + r - 2a  (>=K -> zero)
    return 3, 1, [[4, 2, 0], [5, 3, 1]]


def _convT_subpixel_weight(wt, stride, padding, output_padding, cin_pad):
    """torch ConvTranspose2d weight (Cin, Cout, KH, KW) -> effective stride-1
    conv weight (Ah, Aw, Cin_pad, n_phases*Cout), phase-major channel-minor."""
    cin, cout, KH, KW = wt.shape
    Ah, pad_h, idx_h = _subpixel_plan(KH, stride[0], padding[0], output_padding[0])
    Aw, pad_w, idx_w = _subpixel_plan(KW, stride[1], padding[1], output_padding[1])
    nph_h, nph_w = len(idx_h), len(idx_w)
    zero = jnp.zeros((cin, cout), wt.dtype)
    blocks = []
    for rh in range(nph_h):
        for rw in range(nph_w):
            rows = []
            for a in range(Ah):
                cols = []
                for b in range(Aw):
                    kh = idx_h[rh][a]
                    kw = idx_w[rw][b]
                    cols.append(wt[:, :, kh, kw] if (kh < KH and kw < KW) else zero)
                rows.append(jnp.stack(cols, axis=0))        # (Aw, Cin, Cout)
            blocks.append(jnp.stack(rows, axis=0))          # (Ah, Aw, Cin, Cout)
    w4 = jnp.concatenate(blocks, axis=-1)                   # (Ah, Aw, Cin, nph*Cout)
    if cin_pad != cin:
        w4 = jnp.pad(w4, ((0, 0), (0, 0), (0, cin_pad - cin), (0, 0)))
    return w4, (Ah, Aw), (pad_h, pad_w), (nph_h, nph_w)


def _space_to_depth(x, sh, sw):
    N, H, W, C = x.shape
    x = x.reshape(N, H // sh, sh, W // sw, sw, C)
    x = jnp.transpose(x, (0, 1, 3, 2, 4, 5))
    return x.reshape(N, H // sh, W // sw, sh * sw * C)


def _depth_to_space(x, sh, sw, c):
    N, H, W, _ = x.shape
    x = x.reshape(N, H, W, sh, sw, c)
    x = jnp.transpose(x, (0, 1, 3, 2, 4, 5))
    return x.reshape(N, H * sh, W * sw, c)


# ---------------------------------------------------------------------------
# Layer wrappers
# ---------------------------------------------------------------------------
def down_block(x_nhwc, w_torch, stride, padding):
    cout, cin, kh, kw = w_torch.shape
    cin_pad = _round_up(cin, CIN_ALIGN)
    xb = _pad_channels(x_nhwc.astype(jnp.bfloat16))
    patches, (N, Ho, Wo) = _im2col(xb, kh, kw, stride[0], stride[1],
                                   padding[0], padding[1])
    w_mat = _conv_w_to_mat(w_torch, cin_pad).astype(jnp.bfloat16)
    out = fused_conv_call(patches, w_mat, n_phases=1, bn_act=True)
    return out.reshape(N, Ho, Wo, cout)


def up_block(x_nhwc, wt_torch, stride, padding, output_padding, skip_nhwc):
    cin, cout = wt_torch.shape[0], wt_torch.shape[1]
    cin_pad = _round_up(cin, CIN_ALIGN)
    w4, (Ah, Aw), (ph, pw), (nh, nw) = _convT_subpixel_weight(
        wt_torch, stride, padding, output_padding, cin_pad)
    n_ph = nh * nw
    w_mat = w4.reshape(Ah * Aw * cin_pad, n_ph * cout).astype(jnp.bfloat16)

    xb = _pad_channels(x_nhwc.astype(jnp.bfloat16))
    patches, (N, Ho, Wo) = _im2col(xb, Ah, Aw, 1, 1, ph, pw)

    # pack the skip so conv -> BN -> LeakyReLU -> (+skip) fuses in the
    # phase-packed (lane-denser) layout; unpacked only once at the end.
    res = _space_to_depth(skip_nhwc.astype(jnp.bfloat16), nh, nw)
    res2d = res.reshape(N * Ho * Wo, n_ph * cout)

    y = fused_conv_call(patches, w_mat, n_phases=n_ph, residual=res2d,
                        bn_act=True)
    y = y.reshape(N, Ho, Wo, n_ph * cout)
    return _depth_to_space(y, nh, nw, cout)


def out_head(u1_nhwc, wt_torch, bias, pool_w):
    """out_conv (ConvTranspose2d + bias) and F.avg_pool2d((1, pool_w)) fused
    into one Pallas matmul: the transposed conv has kernel/stride 1 along W,
    so width pooling commutes with it and is baked into the weight."""
    N, H, W, C = u1_nhwc.shape
    nclass = wt_torch.shape[1]
    nwin = W // pool_w
    cin_pad = _round_up(C, CIN_ALIGN)

    w4, (Ah, Aw), (ph, pw), (nh, nw) = _convT_subpixel_weight(
        wt_torch, (2, 1), (2, 0), (1, 0), cin_pad)
    assert Aw == 1 and pw == 0 and nw == 1
    w_head = jnp.broadcast_to(w4[:, 0][:, None, :, :] / float(pool_w),
                              (Ah, pool_w, cin_pad, nh * nclass))
    w_head = w_head.reshape(Ah * pool_w * cin_pad, nh * nclass).astype(jnp.bfloat16)
    bias_eff = jnp.tile(bias.reshape(1, nclass).astype(jnp.float32), (1, nh))

    xb = _pad_channels(u1_nhwc.astype(jnp.bfloat16))
    xb = xb[:, :, :nwin * pool_w, :]
    xb = jnp.pad(xb, ((0, 0), (ph, ph), (0, 0), (0, 0)))     # H halo (3 taps)
    cols = [xb[:, a:a + H, :, :].reshape(N, H, nwin, pool_w * cin_pad)
            for a in range(Ah)]
    patches = jnp.concatenate(cols, axis=-1).reshape(
        N * H * nwin, Ah * pool_w * cin_pad)

    y = fused_conv_call(patches, w_head, n_phases=nh, bias=bias_eff,
                        bn_act=False, out_dtype=jnp.float32)
    y = y.reshape(N, H, nwin, nh * nclass)
    y = _depth_to_space(y, nh, 1, nclass)                    # (N, 2H, nwin, nclass)
    return jnp.squeeze(y)                                    # torch .squeeze()


# ---------------------------------------------------------------------------
# UNetVad forward
# ---------------------------------------------------------------------------
def init_params(key, n_filters, nclass=1):
    def nrm(k, shape):
        return 0.1 * jax.random.normal(k, shape, dtype=jnp.float32)

    ks = jax.random.split(key, 11)
    f = n_filters
    return {
        # down: torch Conv2d weights (Cout, Cin, KH, KW), bias=False
        "d1": nrm(ks[0], (f[0], 3, 5, 5)),
        "d2": nrm(ks[1], (f[1], f[0], 5, 5)),
        "d3": nrm(ks[2], (f[2], f[1], 5, 5)),
        "d4": nrm(ks[3], (f[3], f[2], 5, 1)),
        "d5": nrm(ks[4], (f[4], f[3], 5, 1)),
        # up: torch ConvTranspose2d weights (Cin, Cout, KH, KW), bias=False
        "u4": nrm(ks[5], (f[4], f[-4], 5, 1)),
        "u3": nrm(ks[6], (f[-4], f[-3], 5, 1)),
        "u2": nrm(ks[7], (f[-3], f[-2], 5, 5)),
        "u1": nrm(ks[8], (f[-2], f[-1], 5, 5)),
        # out_conv: ConvTranspose2d(f[-1], nclass), bias=True
        "oc_w": nrm(ks[9], (f[-1], nclass, 5, 1)),
        "oc_b": nrm(ks[10], (nclass,)),
    }


@jax.jit
def unet_vad_forward(params, x_nchw):
    # PyTorch input is NCHW; convert to NHWC for the kernel pipeline.
    x = jnp.transpose(x_nchw, (0, 2, 3, 1)).astype(jnp.float32)

    # ---- down path (Conv2d + BN + LeakyReLU) ----
    d1 = down_block(x,  params["d1"], (2, 2), (2, 2))
    d2 = down_block(d1, params["d2"], (2, 2), (2, 2))
    d3 = down_block(d2, params["d3"], (2, 2), (2, 2))
    d4 = down_block(d3, params["d4"], (2, 1), (2, 0))
    d5 = down_block(d4, params["d5"], (2, 1), (2, 0))

    # ---- up path (ConvTranspose2d + BN + LeakyReLU, then add skip) ----
    u4 = up_block(d5, params["u4"], (2, 1), (2, 0), (1, 0), d4)
    u3 = up_block(u4, params["u3"], (2, 1), (2, 0), (1, 0), d3)
    u2 = up_block(u3, params["u2"], (2, 2), (2, 2), (1, 1), d2)
    u1 = up_block(u2, params["u1"], (2, 2), (2, 2), (1, 1), d1)

    # ---- out_conv + F.avg_pool2d(x5, kernel_size=(1, 12)).squeeze() ----
    return out_head(u1, params["oc_w"], params["oc_b"], pool_w=12)


if __name__ == "__main__":
    key = jax.random.PRNGKey(0)
    k_par, k_x, k_p, k_w, k_r = jax.random.split(key, 5)

    # --- self-check: tiled fallback vs. single-shot path on a tiny problem ---
    P_t, K_t, Ct, nph = 96, 40, 32, 2
    pt = jax.random.normal(k_p, (P_t, K_t), dtype=jnp.float32).astype(jnp.bfloat16)
    wt = (0.1 * jax.random.normal(k_w, (K_t, Ct), dtype=jnp.float32)).astype(jnp.bfloat16)
    rt = jax.random.normal(k_r, (P_t, Ct), dtype=jnp.float32).astype(jnp.bfloat16)
    y_single = fused_conv_call(pt, wt, n_phases=nph, residual=rt, bn_act=True)
    y_tiled = fused_conv_call(pt, wt, n_phases=nph, residual=rt, bn_act=True,
                              force_row_tile=32)
    diff = jnp.max(jnp.abs(y_single.astype(jnp.float32) - y_tiled.astype(jnp.float32)))
    assert float(diff) < 6e-2, float(diff)

    # --- full UNetVad forward ---
    # symmetric filters so the skip-adds are channel-compatible
    n_filters = [16, 32, 64, 32, 16]
    params = init_params(k_par, n_filters, nclass=1)

    # Input: NCHW, 3 channels, H=32 (time), W=24 (features) -> final W/12 = 2*... -> (2, 32)
    x = jax.random.normal(k_x, (2, 3, 32, 24), dtype=jnp.float32)

    out = unet_vad_forward(params, x)
    jax.block_until_ready(out)
    assert out.shape == (2, 32), out.shape
    assert jnp.all(jnp.isfinite(out))
    print("KERNEL_OK")
</pallas_src>

<mosaic_0001>
module attributes {stable_mosaic.version = 11 : i64} {
  func.func @kernel(%arg0: memref<96x40xbf16, #tpu.memory_space<vmem>>, %arg1: memref<40x32xbf16, #tpu.memory_space<vmem>>, %arg2: memref<96x32xbf16, #tpu.memory_space<vmem>>, %arg3: memref<96x32xbf16, #tpu.memory_space<vmem>>) attributes {dimension_semantics = [], scalar_prefetch = 0 : i64, scratch_operands = 0 : i64, tpu.core_type = #tpu.core_type<tc>} {
    %c0 = arith.constant 0 : index
    %c0_0 = arith.constant 0 : index
    %0 = vector.load %arg0[%c0, %c0_0] : memref<96x40xbf16, #tpu.memory_space<vmem>>, vector<96x40xbf16>
    %c0_1 = arith.constant 0 : index
    %c0_2 = arith.constant 0 : index
    %1 = vector.load %arg1[%c0_1, %c0_2] : memref<40x32xbf16, #tpu.memory_space<vmem>>, vector<40x32xbf16>
    %cst = arith.constant dense<0.000000e+00> : vector<96x32xf32>
    %2 = tpu.matmul %0, %1, %cst {dimension_numbers = #tpu.dot_dimension_numbers<[1], [0], [0], [1], [0, 0, 1, 1], [], []>} : vector<96x40xbf16>, vector<40x32xbf16>, vector<96x32xf32> -> vector<96x32xf32>
    %cst_3 = arith.constant dense<0.000000e+00> : vector<32xf32>
    %3 = vector.multi_reduction <add>, %2, %cst_3 [0] : vector<96x32xf32> to vector<32xf32>
    %4 = vector.shape_cast %3 : vector<32xf32> to vector<1x32xf32>
    %5 = vector.extract_strided_slice %4 {offsets = [0, 0], sizes = [1, 16], strides = [1, 1]} : vector<1x32xf32> to vector<1x16xf32>
    %6 = vector.extract_strided_slice %4 {offsets = [0, 16], sizes = [1, 16], strides = [1, 1]} : vector<1x32xf32> to vector<1x16xf32>
    %7 = arith.addf %5, %6 : vector<1x16xf32>
    %cst_4 = arith.constant 0.00520833349 : f32
    %8 = vector.broadcast %cst_4 : f32 to vector<1x16xf32>
    %9 = arith.mulf %7, %8 : vector<1x16xf32>
    %10 = tpu.concatenate %9, %9 in 1 : vector<1x16xf32>, vector<1x16xf32> -> vector<1x32xf32>
    %11 = vector.broadcast %10 : vector<1x32xf32> to vector<96x32xf32>
    %12 = arith.subf %2, %11 : vector<96x32xf32>
    %13 = arith.mulf %12, %12 : vector<96x32xf32>
    %cst_5 = arith.constant dense<0.000000e+00> : vector<32xf32>
    %14 = vector.multi_reduction <add>, %13, %cst_5 [0] : vector<96x32xf32> to vector<32xf32>
    %15 = vector.shape_cast %14 : vector<32xf32> to vector<1x32xf32>
    %16 = vector.extract_strided_slice %15 {offsets = [0, 0], sizes = [1, 16], strides = [1, 1]} : vector<1x32xf32> to vector<1x16xf32>
    %17 = vector.extract_strided_slice %15 {offsets = [0, 16], sizes = [1, 16], strides = [1, 1]} : vector<1x32xf32> to vector<1x16xf32>
    %18 = arith.addf %16, %17 : vector<1x16xf32>
    %cst_6 = arith.constant 0.00520833349 : f32
    %19 = vector.broadcast %cst_6 : f32 to vector<1x16xf32>
    %20 = arith.mulf %18, %19 : vector<1x16xf32>
    %cst_7 = arith.constant 9.99999974E-6 : f32
    %21 = vector.broadcast %cst_7 : f32 to vector<1x16xf32>
    %22 = arith.addf %20, %21 : vector<1x16xf32>
    %23 = math.rsqrt %22 : vector<1x16xf32>
    %24 = tpu.concatenate %23, %23 in 1 : vector<1x16xf32>, vector<1x16xf32> -> vector<1x32xf32>
    %25 = vector.broadcast %24 : vector<1x32xf32> to vector<96x32xf32>
    %26 = arith.mulf %12, %25 : vector<96x32xf32>
    %cst_8 = arith.constant 0.000000e+00 : f32
    %27 = vector.broadcast %cst_8 : f32 to vector<96x32xf32>
    %28 = arith.cmpf oge, %26, %27 : vector<96x32xf32>
    %cst_9 = arith.constant 0.00999999977 : f32
    %29 = vector.broadcast %cst_9 : f32 to vector<96x32xf32>
    %30 = arith.mulf %29, %26 : vector<96x32xf32>
    %31 = arith.select %28, %26, %30 : vector<96x32xi1>, vector<96x32xf32>
    %c0_10 = arith.constant 0 : index
    %c0_11 = arith.constant 0 : index
    %32 = vector.load %arg2[%c0_10, %c0_11] : memref<96x32xbf16, #tpu.memory_space<vmem>>, vector<96x32xbf16>
    %33 = arith.extf %32 : vector<96x32xbf16> to vector<96x32xf32>
    %34 = arith.addf %31, %33 : vector<96x32xf32>
    %35 = arith.truncf %34 : vector<96x32xf32> to vector<96x32xbf16>
    %c0_12 = arith.constant 0 : index
    %c0_13 = arith.constant 0 : index
    %36 = vector.load %arg3[%c0_12, %c0_13] : memref<96x32xbf16, #tpu.memory_space<vmem>>, vector<96x32xbf16>
    tpu.vector_store %arg3[%c0_12, %c0_13], %35 {strides = array<i32>} : memref<96x32xbf16, #tpu.memory_space<vmem>>, vector<96x32xbf16>,
    return
  }
}

</mosaic_0001>

<bundles_post_ra>
// kernel: tpu_custom_call.1
= control target key start
LH: loop header
LB: loop body
LE: loop exit
PB: predicated region body
PF: predicated region fallthrough
CT: control target
= control target key end

     0   :  { %vm77_vm0 = vcmask 326656   ;;  %vm96_vm1 = vcmask 1043456   ;;  %vm181_vm2 = vcmask 261120   ;;  %s563_s29 = smov 16   ;;  %v223_v54 = vlaneseq  ;;  %s838_s1 = inlined_call_operand.vmem [shape: bf16[40,32], index: 1, kind: input, shape index: {}]   ;;  %s839_s0 = inlined_call_operand.vmem [shape: bf16[96,40], index: 0, kind: input, shape index: {}]   ;;  %s840_s2 = inlined_call_operand.vmem [shape: bf16[96,32], index: 2, kind: input, shape index: {}]   ;;  %s841_s3 = inlined_call_operand.vmem [shape: bf16[96,32], index: 3, kind: output, shape index: {}]  }
   0x1   :  { %v551_v0 = vld [vmem:[%s838_s1] sm:$0xff]   ;;  %v552_v1 = vld [vmem:[%s838_s1 + $0x8] sm:$0xff]   ;;  %v553_v3 = vld [vmem:[%s838_s1 + $0x10] ss:$0 sps:$4 sm:$0xff]   ;;  %vm221_vm3 = vcmask 130048  }
   0x2   :  { %523 = vmatprep.subr.bf16.mxu0 %v551_v0  ;;  %541 = vmatprep.subr.bf16.mxu1 %v551_v0  ;;  %v554_v2 = vld [vmem:[%s839_s0] sm:$0xff]   ;;  %v556_v4 = vld [vmem:[%s839_s0 + $0x10] sm:$0xff]   ;;  %v98_v5 = vsel %vm96_vm1, %v553_v3, 0  ;;  %v555_v6 = vld [vmem:[%s839_s0 + $0x8] sm:$0xff]   ;;  %v643_v55 = vshrl.u32 %v223_v54, 7 }
   0x3   :  { %524 = vmatpush3.bf16.msra.mxu0 %v551_v0  ;;  %544 = vmatpush3.bf16.msra.mxu1 %v551_v0  ;;  %v557_v7 = vld [vmem:[%s839_s0 + $0x18] sm:$0xff]   ;;  %v558_v8 = vld [vmem:[%s839_s0 + $0x20] sm:$0xff]   ;;  %v559_v9 = vld [vmem:[%s839_s0 + $0x28] sm:$0xff]   ;;  %s562_s0 = smov 112  }
   0x4   :  { %525 = vmatprep.subr.bf16.mxu0 %v552_v1  ;;  %542 = vmatprep.subr.bf16.mxu1 %v552_v1  ;;  %v225_v56 = vsub.s32 0, %v643_v55  ;;  %v710_v54 = vld [vmem:[%s840_s2] sm:$0xff]  }
   0x5   :  { %529 = vmatprep.mubr.msk.bf16.mxu0 %vm77_vm0, %v554_v2  ;;  %533 = vmatprep.mubr.msk.bf16.mxu1 %vm77_vm0, %v556_v4 }
   0x7   :  { %526 = vmatpush3.bf16.msra.mxu0 %v552_v1  ;;  %545 = vmatpush3.bf16.msra.mxu1 %v552_v1 }
   0x8   :  { %547 = vmatprep.subr.msk.bf16.mxu0 %vm96_vm1, %v553_v3  ;;  %548 = vmatprep.subr.msk.bf16.mxu1 %vm96_vm1, %v553_v3 }
   0xb   :  { %528 = vmatpush3.bf16.msra.mxu0 %v98_v5  ;;  %546 = vmatpush3.bf16.msra.mxu1 %v98_v5 }
   0xe   :  { %530 = vmatmul.mubr.msk.bf16.vlgmr.msra.gmra.mrb[0].mxu0 %vm77_vm0, %v555_v6  ;;  %534 = vmatmul.mubr.msk.bf16.vlgmr.msra.gmra.mrb[0].mxu1 %vm77_vm0, %v557_v7 }
   0xf   :  { %537 = vmatprep.mubr.msk.bf16.mxu1 %vm77_vm0, %v558_v8 }
  0x16   :  { %538 = vmatmul.mubr.msk.bf16.gmra.mrb[4].mxu1 %vm77_vm0, %v559_v9  ;;  %vm429_vm0 = vcmask 257024  }
  0xe1   :  { %v531_v10 = vpop.f32.mrb[0].mxu0  ;;  %v617_v11 = vpop.f32.mrb[0].mxu1 }
  0xe2   :  { %v134_v12 = vpop.f32.mrb[1].mxu0  ;;  %v150_v13 = vpop.f32.mrb[1].mxu1  ;;  %v185_v21 = vsel %vm181_vm2, %v531_v10, 0.0  ;;  %v193_v33 = vsel %vm181_vm2, %v617_v11, 0.0 }
  0xe3   :  { %v532_v14 = vpop.f32.mrb[2].mxu0  ;;  %v619_v15 = vpop.f32.mrb[2].mxu1  ;;  %v182_v18 = vsel %vm181_vm2, %v134_v12, 0.0  ;;  %v189_v24 = vsel %vm181_vm2, %v150_v13, 0.0 }
  0xe4   :  { %v137_v16 = vpop.f32.mrb[3].mxu0  ;;  %v153_v17 = vpop.f32.mrb[3].mxu1  ;;  %v187_v23 = vsel %vm181_vm2, %v532_v14, 0.0  ;;  %v195_v35 = vsel %vm181_vm2, %v619_v15, 0.0 }
  0xe5   :  { %v183_v19 = vsel %vm181_vm2, %v137_v16, 0.0  ;;  %v191_v31 = vsel %vm181_vm2, %v153_v17, 0.0 }
  0xe6   :  { %v184_v20 = vadd.f32 %v183_v19, %v182_v18 }
  0xe8   :  { %v186_v22 = vadd.f32 %v185_v21, %v184_v20 }
  0xe9   :  { %v626_v25 = vpop.f32.mrb[4].mxu1 }
  0xea   :  { %v188_v26 = vadd.f32 %v187_v23, %v186_v22  ;;  %v166_v27 = vpop.f32.mrb[5].mxu1  ;;  %v201_v41 = vsel %vm181_vm2, %v626_v25, 0.0 }
  0xeb   :  { %v628_v28 = vpop.f32.mrb[6].mxu1  ;;  %v197_v36 = vsel %vm181_vm2, %v166_v27, 0.0 }
  0xec   :  { %v190_v29 = vadd.f32 %v189_v24, %v188_v26  ;;  %v169_v30 = vpop.f32.mrb[7].mxu1  ;;  %v203_v43 = vsel %vm181_vm2, %v628_v28, 0.0 }
  0xed   :  { %v199_v39 = vsel %vm181_vm2, %v169_v30, 0.0 }
  0xee   :  { %v192_v32 = vadd.f32 %v191_v31, %v190_v29 }
  0xf0   :  { %v194_v34 = vadd.f32 %v193_v33, %v192_v32 }
  0xf2   :  { %v196_v37 = vadd.f32 %v195_v35, %v194_v34 }
  0xf4   :  { %v198_v38 = vadd.f32 %v197_v36, %v196_v37 }
  0xf6   :  { %v200_v40 = vadd.f32 %v199_v39, %v198_v38 }
  0xf8   :  { %v202_v42 = vadd.f32 %v201_v41, %v200_v40 }
  0xfa   :  { %v204_v44 = vadd.f32 %v203_v43, %v202_v42 }
  0xfc   :  { %v205_v45 = vrot.slane %v204_v44, 4 }
  0xfe   :  { %v206_v46 = vadd.f32 %v205_v45, %v204_v44 }
 0x100   :  { %v207_v47 = vrot.slane %v206_v46, 2 }
 0x102   :  { %v208_v48 = vadd.f32 %v207_v47, %v206_v46 }
 0x104   :  { %v209_v49 = vrot.slane %v208_v48, 1 }
 0x106   :  { %v210_v50 = vadd.f32 %v209_v49, %v208_v48 }
 0x108   :  { %212 = vrot.lane.b32.xlu0 %v210_v50, %s562_s0 }
 0x17a   :  { %v213_v51 = vpop.permute.xlu0 %212 }
 0x17b   :  { %v215_v52 = vadd.f32 %v213_v51, %v210_v50 }
 0x17d   :  { %v216_v53 = vmul.f32 0.0052083335, %v215_v52 }
 0x17f   :  { %218 = vrot.lane.b32.xlu0 %v216_v53, %s563_s29 }
 0x1f1   :  { %v219_v57 = vpop.permute.xlu0 %218 }
 0x1f2   :  { %v222_v58 = vsel %vm221_vm3, %v216_v53, %v219_v57  ;;  %v715_v57 = vld [vmem:[%s840_s2 + $0x8] sm:$0xff]  }
 0x1f3   :  { %v226_v59 = vrot.slane %v222_v58, %v225_v56  ;;  %v720_v58 = vld [vmem:[%s840_s2 + $0x10] sm:$0xff]  }
 0x1f5   :  { %v649_v60 = vsub.f32 %v134_v12, %v226_v59  ;;  %v651_v61 = vsub.f32 %v137_v16, %v226_v59  ;;  %v653_v62 = vsub.f32 %v531_v10, %v226_v59  ;;  %v655_v63 = vsub.f32 %v532_v14, %v226_v59 }
 0x1f6   :  { %v661_v2 = vsub.f32 %v150_v13, %v226_v59  ;;  %v665_v4 = vsub.f32 %v153_v17, %v226_v59  ;;  %v672_v9 = vsub.f32 %v617_v11, %v226_v59  ;;  %v678_v14 = vsub.f32 %v619_v15, %v226_v59 }
 0x1f7   :  { %v239_v0 = vmul.f32 %v649_v60, %v649_v60  ;;  %v240_v1 = vmul.f32 %v651_v61, %v651_v61  ;;  %v241_v3 = vmul.f32 %v653_v62, %v653_v62  ;;  %v242_v5 = vmul.f32 %v655_v63, %v655_v63 }
 0x1f8   :  { %v243_v10 = vmul.f32 %v661_v2, %v661_v2  ;;  %v244_v16 = vmul.f32 %v665_v4, %v665_v4  ;;  %v683_v19 = vsub.f32 %v166_v27, %v226_v59  ;;  %v245_v11 = vmul.f32 %v672_v9, %v672_v9 }
 0x1f9   :  { %v251_v6 = vsel %vm181_vm2, %v239_v0, 0.0  ;;  %v252_v7 = vsel %vm181_vm2, %v240_v1, 0.0  ;;  %v254_v12 = vsel %vm181_vm2, %v241_v3, 0.0  ;;  %v256_v17 = vsel %vm181_vm2, %v242_v5, 0.0  ;;  %v730_v0 = vld [vmem:[%s840_s2 + $0x20] sm:$0xff]  }
 0x1fa   :  { %v253_v8 = vadd.f32 %v252_v7, %v251_v6  ;;  %v258_v20 = vsel %vm181_vm2, %v243_v10, 0.0  ;;  %v688_v22 = vsub.f32 %v169_v30, %v226_v59  ;;  %v246_v15 = vmul.f32 %v678_v14, %v678_v14 }
 0x1fb   :  { %v260_v23 = vsel %vm181_vm2, %v244_v16, 0.0  ;;  %v237_v26 = vsub.f32 %v626_v25, %v226_v59  ;;  %v247_v27 = vmul.f32 %v683_v19, %v683_v19  ;;  %v262_v29 = vsel %vm181_vm2, %v245_v11, 0.0 }
 0x1fc   :  { %v255_v13 = vadd.f32 %v254_v12, %v253_v8  ;;  %v238_v32 = vsub.f32 %v628_v28, %v226_v59  ;;  %v248_v30 = vmul.f32 %v688_v22, %v688_v22  ;;  %v264_v33 = vsel %vm181_vm2, %v246_v15, 0.0  ;;  %v725_v59 = vld [vmem:[%s840_s2 + $0x18] sm:$0xff]  }
 0x1fd   :  { %v249_v35 = vmul.f32 %v237_v26, %v237_v26  ;;  %v266_v36 = vsel %vm181_vm2, %v247_v27, 0.0  ;;  %v487_v3 = vunpack.c.l.bf16 %v710_v54  ;;  %v488_v5 = vunpack.c.h.bf16 %v710_v54 }
 0x1fe   :  { %v257_v18 = vadd.f32 %v256_v17, %v255_v13  ;;  %v250_v38 = vmul.f32 %v238_v32, %v238_v32  ;;  %v268_v25 = vsel %vm181_vm2, %v248_v30, 0.0  ;;  %v491_v6 = vunpack.c.l.bf16 %v715_v57 }
 0x1ff   :  { %v270_v40 = vsel %vm181_vm2, %v249_v35, 0.0  ;;  %v492_v8 = vunpack.c.h.bf16 %v715_v57  ;;  %v495_v10 = vunpack.c.l.bf16 %v720_v58  ;;  %v496_v12 = vunpack.c.h.bf16 %v720_v58 }
 0x200   :  { %v259_v21 = vadd.f32 %v258_v20, %v257_v18  ;;  %v272_v42 = vsel %vm181_vm2, %v250_v38, 0.0  ;;  %v499_v16 = vunpack.c.l.bf16 %v725_v59  ;;  %v500_v17 = vunpack.c.h.bf16 %v725_v59 }
 0x201   :  { %v503_v18 = vunpack.c.l.bf16 %v730_v0  ;;  %v504_v11 = vunpack.c.h.bf16 %v730_v0 }
 0x202   :  { %v261_v24 = vadd.f32 %v260_v23, %v259_v21 }
 0x204   :  { %v263_v31 = vadd.f32 %v262_v29, %v261_v24 }
 0x206   :  { %v265_v34 = vadd.f32 %v264_v33, %v263_v31 }
 0x208   :  { %v267_v37 = vadd.f32 %v266_v36, %v265_v34 }
 0x20a   :  { %v269_v39 = vadd.f32 %v268_v25, %v267_v37 }
 0x20c   :  { %v271_v41 = vadd.f32 %v270_v40, %v269_v39 }
 0x20e   :  { %v273_v28 = vadd.f32 %v272_v42, %v271_v41 }
 0x210   :  { %v274_v43 = vrot.slane %v273_v28, 4 }
 0x212   :  { %v275_v44 = vadd.f32 %v274_v43, %v273_v28 }
 0x214   :  { %v276_v45 = vrot.slane %v275_v44, 2 }
 0x216   :  { %v277_v46 = vadd.f32 %v276_v45, %v275_v44 }
 0x218   :  { %v278_v47 = vrot.slane %v277_v46, 1 }
 0x21a   :  { %v279_v48 = vadd.f32 %v278_v47, %v277_v46 }
 0x21c   :  { %281 = vrot.lane.b32.xlu1 %v279_v48, %s562_s0 }
 0x28e   :  { %v282_v49 = vpop.permute.xlu1 %281 }
 0x28f   :  { %v284_v50 = vadd.f32 %v282_v49, %v279_v48 }
 0x291   :  { %v285_v51 = vmul.f32 0.0052083335, %v284_v50 }
 0x293   :  { %v286_v52 = vadd.f32 1e-05, %v285_v51 }
 0x295   :  { %560 = vrsqrt.f32 %v286_v52 }
 0x29f   :  { %v561_v53 = vpop.eup %560 }
 0x2a0   :  { %289 = vrot.lane.b32.xlu1 %v561_v53, %s563_s29 }
 0x312   :  { %v290_v1 = vpop.permute.xlu1 %289 }
 0x313   :  { %v292_v7 = vsel %vm221_vm3, %v561_v53, %v290_v1 }
 0x314   :  { %v296_v13 = vrot.slane %v292_v7, %v225_v56 }
 0x316   :  { %v297_v20 = vmul.f32 %v296_v13, %v649_v60  ;;  %v298_v21 = vmul.f32 %v296_v13, %v651_v61  ;;  %v299_v15 = vmul.f32 %v296_v13, %v653_v62  ;;  %v300_v23 = vmul.f32 %v296_v13, %v655_v63  ;;  %v513_v61 = vld [vmem:[%s840_s2 + $0x28] sm:$0xff]  }
 0x317   :  { %v301_v24 = vmul.f32 %v296_v13, %v661_v2  ;;  %v302_v55 = vmul.f32 %v296_v13, %v665_v4  ;;  %v303_v56 = vmul.f32 %v296_v13, %v672_v9  ;;  %v304_v27 = vmul.f32 %v296_v13, %v678_v14 }
 0x318   :  { %v305_v29 = vmul.f32 %v296_v13, %v683_v19  ;;  %v306_v31 = vmul.f32 %v296_v13, %v688_v22  ;;  %v307_v30 = vmul.f32 %v296_v13, %v237_v26  ;;  %v308_v60 = vmul.f32 %v296_v13, %v238_v32 }
 0x319   :  { %vm309_vm4 = vcmp.ge.f32.partialorder %v297_v20, 0.0  ;;  %vm310_vm5 = vcmp.ge.f32.partialorder %v298_v21, 0.0  ;;  %vm311_vm6 = vcmp.ge.f32.partialorder %v299_v15, 0.0  ;;  %vm312_vm7 = vcmp.ge.f32.partialorder %v300_v23, 0.0 }
 0x31a   :  { %vm313_vm8 = vcmp.ge.f32.partialorder %v301_v24, 0.0  ;;  %vm314_vm9 = vcmp.ge.f32.partialorder %v302_v55, 0.0  ;;  %vm315_vm10 = vcmp.ge.f32.partialorder %v303_v56, 0.0  ;;  %vm316_vm11 = vcmp.ge.f32.partialorder %v304_v27, 0.0 }
 0x31b   :  { %vm317_vm12 = vcmp.ge.f32.partialorder %v305_v29, 0.0  ;;  %vm318_vm13 = vcmp.ge.f32.partialorder %v306_v31, 0.0  ;;  %vm319_vm14 = vcmp.ge.f32.partialorder %v307_v30, 0.0  ;;  %vm320_vm15 = vcmp.ge.f32.partialorder %v308_v60, 0.0 }
 0x31c   :  { %v507_v62 = vunpack.c.l.bf16 %v513_v61  ;;  %v321_v63 = vmul.f32 0.01, %v297_v20  ;;  %v322_v2 = vmul.f32 0.01, %v298_v21  ;;  %v323_v4 = vmul.f32 0.01, %v299_v15 }
 0x31d   :  { %v508_v9 = vunpack.c.h.bf16 %v513_v61  ;;  %v324_v14 = vmul.f32 0.01, %v300_v23  ;;  %v325_v19 = vmul.f32 0.01, %v301_v24  ;;  %v326_v22 = vmul.f32 0.01, %v302_v55 }
 0x31e   :  { %v327_v26 = vmul.f32 0.01, %v303_v56  ;;  %v328_v32 = vmul.f32 0.01, %v304_v27  ;;  %v329_v33 = vmul.f32 0.01, %v305_v29  ;;  %v333_v34 = vsel %vm309_vm4, %v297_v20, %v321_v63 }
 0x31f   :  { %v330_v35 = vmul.f32 0.01, %v306_v31  ;;  %v331_v36 = vmul.f32 0.01, %v307_v30  ;;  %v332_v37 = vmul.f32 0.01, %v308_v60  ;;  %v334_v38 = vsel %vm310_vm5, %v298_v21, %v322_v2 }
 0x320   :  { %v335_v25 = vsel %vm311_vm6, %v299_v15, %v323_v4  ;;  %v336_v39 = vsel %vm312_vm7, %v300_v23, %v324_v14  ;;  %v337_v40 = vsel %vm313_vm8, %v301_v24, %v325_v19  ;;  %v338_v41 = vsel %vm314_vm9, %v302_v55, %v326_v22 }
 0x321   :  { %v339_v42 = vsel %vm315_vm10, %v303_v56, %v327_v26  ;;  %v340_v28 = vsel %vm316_vm11, %v304_v27, %v328_v32  ;;  %v341_v43 = vsel %vm317_vm12, %v305_v29, %v329_v33  ;;  %v342_v44 = vsel %vm318_vm13, %v306_v31, %v330_v35 }
 0x322   :  { %v343_v45 = vsel %vm319_vm14, %v307_v30, %v331_v36  ;;  %v344_v46 = vsel %vm320_vm15, %v308_v60, %v332_v37  ;;  %v369_v47 = vadd.f32 %v487_v3, %v333_v34  ;;  %v370_v48 = vadd.f32 %v488_v5, %v334_v38 }
 0x323   :  { %v371_v49 = vadd.f32 %v491_v6, %v335_v25  ;;  %v372_v50 = vadd.f32 %v492_v8, %v336_v39  ;;  %v373_v51 = vadd.f32 %v495_v10, %v337_v40  ;;  %v374_v52 = vadd.f32 %v496_v12, %v338_v41 }
 0x324   :  { %v375_v53 = vadd.f32 %v499_v16, %v339_v42  ;;  %v376_v1 = vadd.f32 %v500_v17, %v340_v28  ;;  %v377_v54 = vadd.f32 %v503_v18, %v341_v43  ;;  %v378_v3 = vadd.f32 %v504_v11, %v342_v44 }
 0x325   :  { %v379_v57 = vadd.f32 %v507_v62, %v343_v45  ;;  %v380_v5 = vadd.f32 %v508_v9, %v344_v46  ;;  %v473_v6 = vpack.c.bf16 %v369_v47, %v369_v47  ;;  %v474_v7 = vpack.c.bf16 %v370_v48, %v370_v48 }
 0x326   :  { %v475_v8 = vpack.c.bf16 %v371_v49, %v371_v49  ;;  %v476_v10 = vpack.c.bf16 %v372_v50, %v372_v50  ;;  %v477_v58 = vpack.c.bf16 %v373_v51, %v373_v51  ;;  %v478_v12 = vpack.c.bf16 %v374_v52, %v374_v52 }
 0x327   :  { %v479_v13 = vpack.c.bf16 %v375_v53, %v375_v53  ;;  %v480_v20 = vpack.c.bf16 %v376_v1, %v376_v1  ;;  %v481_v16 = vpack.c.bf16 %v377_v54, %v377_v54  ;;  %v482_v21 = vpack.c.bf16 %v378_v3, %v378_v3  ;;  %430 = vst.msk [vmem:[%s841_s3] sm:$0xf] %vm429_vm0, %v473_v6 }
 0x328   :  { %431 = vst.msk [vmem:[%s841_s3 + $0x4] sm:$0xf] %vm429_vm0, %v474_v7  ;;  %v483_v59 = vpack.c.bf16 %v379_v57, %v379_v57  ;;  %v484_v0 = vpack.c.bf16 %v380_v5, %v380_v5  ;;  %432 = vst.msk [vmem:[%s841_s3 + $0x8] sm:$0xf] %vm429_vm0, %v475_v8 }
 0x329   :  { %433 = vst.msk [vmem:[%s841_s3 + $0xc] sm:$0xf] %vm429_vm0, %v476_v10  ;;  %434 = vst.msk [vmem:[%s841_s3 + $0x10] sm:$0xf] %vm429_vm0, %v477_v58 }
 0x32a   :  { %435 = vst.msk [vmem:[%s841_s3 + $0x14] sm:$0xf] %vm429_vm0, %v478_v12  ;;  %436 = vst.msk [vmem:[%s841_s3 + $0x18] sm:$0xf] %vm429_vm0, %v479_v13 }
 0x32b   :  { %437 = vst.msk [vmem:[%s841_s3 + $0x1c] sm:$0xf] %vm429_vm0, %v480_v20  ;;  %438 = vst.msk [vmem:[%s841_s3 + $0x20] sm:$0xf] %vm429_vm0, %v481_v16 }
 0x32c   :  { %439 = vst.msk [vmem:[%s841_s3 + $0x24] sm:$0xf] %vm429_vm0, %v482_v21  ;;  %440 = vst.msk [vmem:[%s841_s3 + $0x28] sm:$0xf] %vm429_vm0, %v483_v59 }
 0x32d   :  { %441 = vst.msk [vmem:[%s841_s3 + $0x2c] sm:$0xf] %vm429_vm0, %v484_v0 }

</bundles_post_ra>
